<compile_context>
chip_gen: v6e
topology: v6e:2x2x1
jax: 0.10.0
libtpu: 0.0.40
codegen_flags: <defaults>
</compile_context>

<pallas_src>
import jax
import jax.numpy as jnp
from jax import lax
from jax.experimental import pallas as pl
from jax.experimental.pallas import tpu as pltpu

# ----------------------------- model dims ----------------------------------
BATCH = 2
SEQ = 8          # question length
VOCAB = 50
EMB = 32         # word embedding dim
NUM_OBJS = 8
OBJ_DIM = 16     # v feature dim
B_DIM = 4        # spatial/box dim (unused by forward, as in the reference)
HID = 32         # q_emb / v_emb hidden dim
ATT_HID = 32     # attention hidden dim
HID2 = 32        # q_net / v_net output dim
NUM_CLASSES = 10

VOCAB_PAD = ((VOCAB + 7) // 8) * 8   # 56: sublane-multiple one-hot width
BS = BATCH * SEQ                     # 16 gathered embedding rows

assert HID == ATT_HID == HID2, "slab packing assumes equal hidden widths"

# ---- packed weight-slab layout: single [HID, SLAB_COLS] lane-dense operand ----
C_WHH = 0                        # W_hh                   [HID, HID]
C_WQF = C_WHH + HID              # [W_aq | W_q]           [HID, ATT_HID+HID2]
C_WV = C_WQF + ATT_HID + HID2    # W_v                    [HID, HID2]
C_WC = C_WV + HID2               # W_c                    [HID, NUM_CLASSES]
C_BIAS = C_WC + 16               # bias rows (R_* below)  [6, HID]
C_WVF = C_BIAS + HID             # [W_lin | W_lin@W_av]   [OBJ_DIM, HID+ATT_HID]
SLAB_COLS = 256                  # pad to 2 full 128-lane tiles

R_BLIN, R_BATT, R_WA, R_BQ, R_BV, R_BC = 0, 1, 2, 3, 4, 5


# ----------------------------- Pallas kernel --------------------------------
def attention_kernel(q_ids_ref,    # VMEM [B*S, 1] int32, time-major (row t*B+b)
                     emb_proj_ref, # VMEM [VOCAB_PAD, HID]  = emb @ W_ih + b_h
                     v_ref,        # VMEM [B*N, OBJ_DIM]
                     slab_ref,     # VMEM [HID, SLAB_COLS]  packed weights/biases
                     out_ref):     # VMEM [B, NUM_CLASSES]
    f32 = jnp.float32

    # One load of the packed slab; static slices are cheap views of the value.
    W = slab_ref[...]
    W_hh = W[:, C_WHH:C_WHH + HID]
    W_qf = W[:, C_WQF:C_WQF + ATT_HID + HID2]
    W_v = W[:, C_WV:C_WV + HID2]
    W_c = W[:, C_WC:C_WC + NUM_CLASSES]
    W_vf = W[:OBJ_DIM, C_WVF:C_WVF + HID + ATT_HID]
    b_lin = W[R_BLIN:R_BLIN + 1, C_BIAS:C_BIAS + HID]
    b_att = W[R_BATT:R_BATT + 1, C_BIAS:C_BIAS + ATT_HID]
    w_a = W[R_WA:R_WA + 1, C_BIAS:C_BIAS + ATT_HID]
    b_q = W[R_BQ:R_BQ + 1, C_BIAS:C_BIAS + HID2]
    b_v = W[R_BV:R_BV + 1, C_BIAS:C_BIAS + HID2]
    b_c = W[R_BC:R_BC + 1, C_BIAS:C_BIAS + NUM_CLASSES]

    # --- embedding gather as ONE one-hot MXU matmul (W_ih/b_h pre-folded).
    # ids >= VOCAB_PAD match nothing -> zero row; no OOB read possible.
    ids = q_ids_ref[...]                                           # [BS, 1] i32
    iota = lax.broadcasted_iota(jnp.int32, (BS, VOCAB_PAD), 1)
    onehot = (iota == ids).astype(f32)                             # [BS, VOCAB_PAD]
    x = jnp.dot(onehot, emb_proj_ref[...],
                preferred_element_type=f32)                        # [BS, HID]

    # --- tanh RNN (static unroll, one MXU matmul + one EUP tanh per step).
    h = jnp.zeros((BATCH, HID), f32)
    for t in range(SEQ):
        x_t = x[t * BATCH:(t + 1) * BATCH, :]                      # [B, HID]
        h = jnp.tanh(x_t + jnp.dot(h, W_hh, preferred_element_type=f32))
    q_emb = h                                                      # [B, HID]

    # --- fused q-side projection: [W_aq | W_q] in one matmul
    q_proj = jnp.dot(q_emb, W_qf, preferred_element_type=f32)      # [B, A+H2]
    proj_q = q_proj[:, :ATT_HID]                                   # [B, A]
    q_repr = jax.nn.relu(q_proj[:, ATT_HID:] + b_q)                # [B, H2]

    # --- fused v-side projection; ONE reshape to [B, N, H+A], then slice.
    v_fused = jnp.dot(v_ref[...], W_vf,
                      preferred_element_type=f32)                  # [B*N, H+A]
    v_fused = v_fused.reshape(BATCH, NUM_OBJS, HID + ATT_HID)      # [B, N, H+A]
    v_emb = v_fused[:, :, :HID] + b_lin                            # [B, N, H]
    proj_v = v_fused[:, :, HID:]                                   # [B, N, A]

    # --- additive attention + softmax over objects
    att_h = jax.nn.relu(proj_v + proj_q[:, None, :] + b_att)       # [B, N, A]
    # 1-column MXU matmul replaced by VPU multiply + lane reduce
    att_logits = jnp.sum(att_h * w_a, axis=-1)                     # [B, N]
    att_logits = att_logits - jnp.max(att_logits, axis=-1, keepdims=True)
    att_e = jnp.exp(att_logits)
    att = att_e / jnp.sum(att_e, axis=-1, keepdims=True)           # [B, N]

    # --- attention-weighted sum over objects
    v_emb1 = jnp.sum(att[:, :, None] * v_emb, axis=1)              # [B, H]

    # --- v_net / joint / classifier
    v_repr = jax.nn.relu(jnp.dot(v_emb1, W_v,
                                 preferred_element_type=f32) + b_v)
    joint = q_repr * v_repr                                        # [B, H2]
    out_ref[...] = (jnp.dot(joint, W_c,
                            preferred_element_type=f32) + b_c)     # [B, C]


# ----------------------------- param fusion ----------------------------------
def fuse_params(params):
    """One-time algebraic parameter fusion + slab packing (exact in f32)."""
    f32 = jnp.float32

    # Fold W_ih and b_h into the embedding table, pad rows to sublane multiple.
    emb_proj = params["emb"].astype(f32) @ params["W_ih"] + params["b_h"]
    emb_proj = jnp.zeros((VOCAB_PAD, HID), f32).at[:VOCAB].set(emb_proj)

    # [W_lin | W_lin @ W_av]  and  [W_aq | W_q];  b_att = b_a + b_lin @ W_av
    W_vfused = jnp.concatenate(
        [params["W_lin"], params["W_lin"] @ params["W_av"]], axis=1)   # [16, 64]
    W_qfused = jnp.concatenate([params["W_aq"], params["W_q"]], axis=1)  # [32, 64]
    b_att = params["b_a"] + params["b_lin"] @ params["W_av"]

    # Pack everything else into one lane-dense [HID, 256] slab.
    slab = jnp.zeros((HID, SLAB_COLS), f32)
    slab = slab.at[:, C_WHH:C_WHH + HID].set(params["W_hh"])
    slab = slab.at[:, C_WQF:C_WQF + ATT_HID + HID2].set(W_qfused)
    slab = slab.at[:, C_WV:C_WV + HID2].set(params["W_v"])
    slab = slab.at[:, C_WC:C_WC + NUM_CLASSES].set(params["W_c"])
    slab = slab.at[R_BLIN, C_BIAS:C_BIAS + HID].set(params["b_lin"][0])
    slab = slab.at[R_BATT, C_BIAS:C_BIAS + ATT_HID].set(b_att[0])
    slab = slab.at[R_WA, C_BIAS:C_BIAS + ATT_HID].set(params["w_a"][:, 0])
    slab = slab.at[R_BQ, C_BIAS:C_BIAS + HID2].set(params["b_q"][0])
    slab = slab.at[R_BV, C_BIAS:C_BIAS + HID2].set(params["b_v"][0])
    slab = slab.at[R_BC, C_BIAS:C_BIAS + NUM_CLASSES].set(params["b_c"][0])
    slab = slab.at[:OBJ_DIM, C_WVF:C_WVF + HID + ATT_HID].set(W_vfused)

    # TODO(synk): for v6e/v7x at realistic batch, store emb_proj/slab in bf16
    # (MXU inputs only; keep f32 accumulation + f32 elementwise for v5e).
    return dict(emb_proj=emb_proj, slab=slab)


# ----------------------------- wrapper ---------------------------------------
@jax.jit
def attention_forward(fused, v, b, q, labels):
    """Mirror of AttentionModel.forward (b, labels unused, as in reference)."""
    del b, labels
    f32 = jnp.float32
    Bsz, N, D = v.shape
    S = q.shape[1]
    v_flat = v.astype(f32).reshape(Bsz * N, D)
    # time-major token ids: row t*B + b  ->  embedding row for (batch b, step t)
    q_ids = q.astype(jnp.int32).T.reshape(Bsz * S, 1)

    operands = (q_ids, fused["emb_proj"], v_flat, fused["slab"])

    full = lambda i: (0, 0)            # single full-array block per 2-D operand
    in_specs = [pl.BlockSpec(x.shape, full) for x in operands]
    out_specs = pl.BlockSpec((Bsz, NUM_CLASSES), full)

    flops = (2 * BS * VOCAB_PAD * HID                    # one-hot gather matmul
             + 2 * Bsz * HID * HID * S                   # RNN h @ W_hh
             + 2 * Bsz * N * D * (HID + ATT_HID)         # fused v projection
             + 2 * Bsz * HID * (ATT_HID + HID2)          # fused q projection
             + 2 * Bsz * HID * HID2                      # v_net
             + 2 * Bsz * HID2 * NUM_CLASSES              # classifier
             + 8 * Bsz * N * ATT_HID)                    # attention elementwise
    transcendentals = Bsz * HID * S + Bsz * N            # tanh + exp
    bytes_accessed = (sum(int(x.size) * x.dtype.itemsize for x in operands)
                      + Bsz * NUM_CLASSES * 4)

    return pl.pallas_call(
        attention_kernel,
        out_shape=jax.ShapeDtypeStruct((Bsz, NUM_CLASSES), f32),
        grid=(1,),
        in_specs=in_specs,
        out_specs=out_specs,
        compiler_params=pltpu.CompilerParams(
            dimension_semantics=("arbitrary",)),
        cost_estimate=pl.CostEstimate(flops=flops,
                                      transcendentals=transcendentals,
                                      bytes_accessed=bytes_accessed),
    )(*operands)


# ----------------------------- reference (pure JAX) --------------------------
def attention_reference(params, v, b, q, labels):
    del b, labels
    we = jnp.take(params["emb"], q, axis=0).astype(jnp.float32)
    h = jnp.zeros((q.shape[0], HID), jnp.float32)
    for t in range(q.shape[1]):
        h = jnp.tanh(we[:, t, :] @ params["W_ih"] + h @ params["W_hh"]
                     + params["b_h"])
    q_emb = h
    v_emb = jnp.einsum("bnd,dh->bnh", v.astype(jnp.float32),
                       params["W_lin"]) + params["b_lin"]
    att_h = jax.nn.relu(jnp.einsum("bnh,ha->bna", v_emb, params["W_av"])
                        + (q_emb @ params["W_aq"])[:, None, :] + params["b_a"])
    logits = jnp.einsum("bna,ao->bn", att_h, params["w_a"])
    att = jax.nn.softmax(logits, axis=-1)
    v_emb1 = jnp.sum(att[:, :, None] * v_emb, axis=1)
    q_repr = jax.nn.relu(q_emb @ params["W_q"] + params["b_q"])
    v_repr = jax.nn.relu(v_emb1 @ params["W_v"] + params["b_v"])
    joint = q_repr * v_repr
    return joint @ params["W_c"] + params["b_c"]


# ----------------------------- params ---------------------------------------
def init_params(key):
    ks = jax.random.split(key, 10)

    def w(k, shape, scale=0.1):
        return (scale * jax.random.normal(k, shape)).astype(jnp.float32)

    return dict(
        emb=w(ks[0], (VOCAB, EMB)),
        W_ih=w(ks[1], (EMB, HID)),
        W_hh=w(ks[2], (HID, HID)),
        b_h=jnp.zeros((1, HID), jnp.float32),
        W_lin=w(ks[3], (OBJ_DIM, HID)),
        b_lin=jnp.zeros((1, HID), jnp.float32),
        W_av=w(ks[4], (HID, ATT_HID)),
        W_aq=w(ks[5], (HID, ATT_HID)),
        b_a=jnp.zeros((1, ATT_HID), jnp.float32),
        w_a=w(ks[6], (ATT_HID, 1)),
        W_q=w(ks[7], (HID, HID2)),
        b_q=jnp.zeros((1, HID2), jnp.float32),
        W_v=w(ks[8], (HID, HID2)),
        b_v=jnp.zeros((1, HID2), jnp.float32),
        W_c=w(ks[9], (HID2, NUM_CLASSES)),
        b_c=jnp.zeros((1, NUM_CLASSES), jnp.float32),
    )


# ----------------------------- main ------------------------------------------
if __name__ == "__main__":
    key = jax.random.PRNGKey(0)
    k_p, k_v, k_b, k_q = jax.random.split(key, 4)

    params = init_params(k_p)
    v = jax.random.normal(k_v, (BATCH, NUM_OBJS, OBJ_DIM), jnp.float32)
    b = jax.random.normal(k_b, (BATCH, NUM_OBJS, B_DIM), jnp.float32)
    q = jax.random.randint(k_q, (BATCH, SEQ), 0, VOCAB, jnp.int32)
    labels = jnp.zeros((BATCH,), jnp.int32)

    fused = fuse_params(params)              # one-time parameter fusion/packing
    logits = attention_forward(fused, v, b, q, labels)
    logits = jax.block_until_ready(logits)

    ref = attention_reference(params, v, b, q, labels)
    assert logits.shape == (BATCH, NUM_CLASSES)
    # fusion is exact algebraically; only accumulation order differs -> tiny
    # f32 rounding differences, hence slightly looser tolerance than 1e-4.
    assert jnp.allclose(logits, ref, atol=1e-3, rtol=1e-3), "mismatch vs reference"

    print("KERNEL_OK")
</pallas_src>

<mosaic_0001>
module attributes {stable_mosaic.version = 11 : i64} {
  func.func @attention_kernel(%arg0: i32, %arg1: memref<16x1xi32, #tpu.memory_space<vmem>>, %arg2: memref<56x32xf32, #tpu.memory_space<vmem>>, %arg3: memref<16x16xf32, #tpu.memory_space<vmem>>, %arg4: memref<32x256xf32, #tpu.memory_space<vmem>>, %arg5: memref<2x10xf32, #tpu.memory_space<vmem>>) attributes {dimension_semantics = [#tpu.dimension_semantics<arbitrary>], iteration_bounds = array<i64: 1>, scalar_prefetch = 0 : i64, scratch_operands = 0 : i64, tpu.core_type = #tpu.core_type<tc>, window_params = [{pipeline_mode = #tpu.pipeline_mode<synchronous>, transform_indices = @transform_0, window_bounds = array<i64: 16, 1>}, {pipeline_mode = #tpu.pipeline_mode<synchronous>, transform_indices = @transform_1, window_bounds = array<i64: 56, 32>}, {pipeline_mode = #tpu.pipeline_mode<synchronous>, transform_indices = @transform_2, window_bounds = array<i64: 16, 16>}, {pipeline_mode = #tpu.pipeline_mode<synchronous>, transform_indices = @transform_3, window_bounds = array<i64: 32, 256>}, {pipeline_mode = #tpu.pipeline_mode<synchronous>, transform_indices = @transform_4, window_bounds = array<i64: 2, 10>}]} {
    %c0 = arith.constant 0 : index
    %c0_0 = arith.constant 0 : index
    %0 = vector.load %arg4[%c0, %c0_0] : memref<32x256xf32, #tpu.memory_space<vmem>>, vector<32x256xf32>
    %1 = vector.extract_strided_slice %0 {offsets = [0, 0], sizes = [32, 32], strides = [1, 1]} : vector<32x256xf32> to vector<32x32xf32>
    %2 = vector.extract_strided_slice %0 {offsets = [0, 32], sizes = [32, 64], strides = [1, 1]} : vector<32x256xf32> to vector<32x64xf32>
    %3 = vector.extract_strided_slice %0 {offsets = [0, 96], sizes = [32, 32], strides = [1, 1]} : vector<32x256xf32> to vector<32x32xf32>
    %4 = vector.extract_strided_slice %0 {offsets = [0, 128], sizes = [32, 10], strides = [1, 1]} : vector<32x256xf32> to vector<32x10xf32>
    %5 = vector.extract_strided_slice %0 {offsets = [0, 176], sizes = [16, 64], strides = [1, 1]} : vector<32x256xf32> to vector<16x64xf32>
    %6 = vector.extract_strided_slice %0 {offsets = [0, 144], sizes = [1, 32], strides = [1, 1]} : vector<32x256xf32> to vector<1x32xf32>
    %7 = vector.extract_strided_slice %0 {offsets = [1, 144], sizes = [1, 32], strides = [1, 1]} : vector<32x256xf32> to vector<1x32xf32>
    %8 = vector.extract_strided_slice %0 {offsets = [2, 144], sizes = [1, 32], strides = [1, 1]} : vector<32x256xf32> to vector<1x32xf32>
    %9 = vector.extract_strided_slice %0 {offsets = [3, 144], sizes = [1, 32], strides = [1, 1]} : vector<32x256xf32> to vector<1x32xf32>
    %10 = vector.extract_strided_slice %0 {offsets = [4, 144], sizes = [1, 32], strides = [1, 1]} : vector<32x256xf32> to vector<1x32xf32>
    %11 = vector.extract_strided_slice %0 {offsets = [5, 144], sizes = [1, 10], strides = [1, 1]} : vector<32x256xf32> to vector<1x10xf32>
    %c0_1 = arith.constant 0 : index
    %c0_2 = arith.constant 0 : index
    %12 = vector.load %arg1[%c0_1, %c0_2] : memref<16x1xi32, #tpu.memory_space<vmem>>, vector<16x1xi32>
    %13 = tpu.iota {dimensions = array<i32: 1>} : vector<16x56xi32>
    %14 = vector.broadcast %12 : vector<16x1xi32> to vector<16x56xi32>
    %15 = arith.cmpi eq, %13, %14 : vector<16x56xi32>
    %16 = arith.extui %15 : vector<16x56xi1> to vector<16x56xi32>
    %17 = arith.sitofp %16 : vector<16x56xi32> to vector<16x56xf32>
    %c0_3 = arith.constant 0 : index
    %c0_4 = arith.constant 0 : index
    %18 = vector.load %arg2[%c0_3, %c0_4] : memref<56x32xf32, #tpu.memory_space<vmem>>, vector<56x32xf32>
    %cst = arith.constant dense<0.000000e+00> : vector<16x32xf32>
    %19 = tpu.matmul %17, %18, %cst {dimension_numbers = #tpu.dot_dimension_numbers<[1], [0], [0], [1], [0, 0, 1, 1], [], []>} : vector<16x56xf32>, vector<56x32xf32>, vector<16x32xf32> -> vector<16x32xf32>
    %cst_5 = arith.constant 0.000000e+00 : f32
    %20 = vector.broadcast %cst_5 : f32 to vector<2x32xf32>
    %21 = vector.extract_strided_slice %19 {offsets = [0, 0], sizes = [2, 32], strides = [1, 1]} : vector<16x32xf32> to vector<2x32xf32>
    %cst_6 = arith.constant dense<0.000000e+00> : vector<2x32xf32>
    %22 = tpu.matmul %20, %1, %cst_6 {dimension_numbers = #tpu.dot_dimension_numbers<[1], [0], [0], [1], [0, 0, 1, 1], [], []>} : vector<2x32xf32>, vector<32x32xf32>, vector<2x32xf32> -> vector<2x32xf32>
    %23 = arith.addf %21, %22 : vector<2x32xf32>
    %24 = math.tanh %23 : vector<2x32xf32>
    %25 = vector.extract_strided_slice %19 {offsets = [2, 0], sizes = [2, 32], strides = [1, 1]} : vector<16x32xf32> to vector<2x32xf32>
    %cst_7 = arith.constant dense<0.000000e+00> : vector<2x32xf32>
    %26 = tpu.matmul %24, %1, %cst_7 {dimension_numbers = #tpu.dot_dimension_numbers<[1], [0], [0], [1], [0, 0, 1, 1], [], []>} : vector<2x32xf32>, vector<32x32xf32>, vector<2x32xf32> -> vector<2x32xf32>
    %27 = arith.addf %25, %26 : vector<2x32xf32>
    %28 = math.tanh %27 : vector<2x32xf32>
    %29 = vector.extract_strided_slice %19 {offsets = [4, 0], sizes = [2, 32], strides = [1, 1]} : vector<16x32xf32> to vector<2x32xf32>
    %cst_8 = arith.constant dense<0.000000e+00> : vector<2x32xf32>
    %30 = tpu.matmul %28, %1, %cst_8 {dimension_numbers = #tpu.dot_dimension_numbers<[1], [0], [0], [1], [0, 0, 1, 1], [], []>} : vector<2x32xf32>, vector<32x32xf32>, vector<2x32xf32> -> vector<2x32xf32>
    %31 = arith.addf %29, %30 : vector<2x32xf32>
    %32 = math.tanh %31 : vector<2x32xf32>
    %33 = vector.extract_strided_slice %19 {offsets = [6, 0], sizes = [2, 32], strides = [1, 1]} : vector<16x32xf32> to vector<2x32xf32>
    %cst_9 = arith.constant dense<0.000000e+00> : vector<2x32xf32>
    %34 = tpu.matmul %32, %1, %cst_9 {dimension_numbers = #tpu.dot_dimension_numbers<[1], [0], [0], [1], [0, 0, 1, 1], [], []>} : vector<2x32xf32>, vector<32x32xf32>, vector<2x32xf32> -> vector<2x32xf32>
    %35 = arith.addf %33, %34 : vector<2x32xf32>
    %36 = math.tanh %35 : vector<2x32xf32>
    %37 = vector.extract_strided_slice %19 {offsets = [8, 0], sizes = [2, 32], strides = [1, 1]} : vector<16x32xf32> to vector<2x32xf32>
    %cst_10 = arith.constant dense<0.000000e+00> : vector<2x32xf32>
    %38 = tpu.matmul %36, %1, %cst_10 {dimension_numbers = #tpu.dot_dimension_numbers<[1], [0], [0], [1], [0, 0, 1, 1], [], []>} : vector<2x32xf32>, vector<32x32xf32>, vector<2x32xf32> -> vector<2x32xf32>
    %39 = arith.addf %37, %38 : vector<2x32xf32>
    %40 = math.tanh %39 : vector<2x32xf32>
    %41 = vector.extract_strided_slice %19 {offsets = [10, 0], sizes = [2, 32], strides = [1, 1]} : vector<16x32xf32> to vector<2x32xf32>
    %cst_11 = arith.constant dense<0.000000e+00> : vector<2x32xf32>
    %42 = tpu.matmul %40, %1, %cst_11 {dimension_numbers = #tpu.dot_dimension_numbers<[1], [0], [0], [1], [0, 0, 1, 1], [], []>} : vector<2x32xf32>, vector<32x32xf32>, vector<2x32xf32> -> vector<2x32xf32>
    %43 = arith.addf %41, %42 : vector<2x32xf32>
    %44 = math.tanh %43 : vector<2x32xf32>
    %45 = vector.extract_strided_slice %19 {offsets = [12, 0], sizes = [2, 32], strides = [1, 1]} : vector<16x32xf32> to vector<2x32xf32>
    %cst_12 = arith.constant dense<0.000000e+00> : vector<2x32xf32>
    %46 = tpu.matmul %44, %1, %cst_12 {dimension_numbers = #tpu.dot_dimension_numbers<[1], [0], [0], [1], [0, 0, 1, 1], [], []>} : vector<2x32xf32>, vector<32x32xf32>, vector<2x32xf32> -> vector<2x32xf32>
    %47 = arith.addf %45, %46 : vector<2x32xf32>
    %48 = math.tanh %47 : vector<2x32xf32>
    %49 = vector.extract_strided_slice %19 {offsets = [14, 0], sizes = [2, 32], strides = [1, 1]} : vector<16x32xf32> to vector<2x32xf32>
    %cst_13 = arith.constant dense<0.000000e+00> : vector<2x32xf32>
    %50 = tpu.matmul %48, %1, %cst_13 {dimension_numbers = #tpu.dot_dimension_numbers<[1], [0], [0], [1], [0, 0, 1, 1], [], []>} : vector<2x32xf32>, vector<32x32xf32>, vector<2x32xf32> -> vector<2x32xf32>
    %51 = arith.addf %49, %50 : vector<2x32xf32>
    %52 = math.tanh %51 : vector<2x32xf32>
    %cst_14 = arith.constant dense<0.000000e+00> : vector<2x64xf32>
    %53 = tpu.matmul %52, %2, %cst_14 {dimension_numbers = #tpu.dot_dimension_numbers<[1], [0], [0], [1], [0, 0, 1, 1], [], []>} : vector<2x32xf32>, vector<32x64xf32>, vector<2x64xf32> -> vector<2x64xf32>
    %54 = vector.extract_strided_slice %53 {offsets = [0, 0], sizes = [2, 32], strides = [1, 1]} : vector<2x64xf32> to vector<2x32xf32>
    %55 = vector.extract_strided_slice %53 {offsets = [0, 32], sizes = [2, 32], strides = [1, 1]} : vector<2x64xf32> to vector<2x32xf32>
    %56 = vector.broadcast %9 : vector<1x32xf32> to vector<2x32xf32>
    %57 = arith.addf %55, %56 : vector<2x32xf32>
    %cst_15 = arith.constant 0.000000e+00 : f32
    %58 = vector.broadcast %cst_15 : f32 to vector<2x32xf32>
    %59 = arith.maximumf %57, %58 : vector<2x32xf32>
    %c0_16 = arith.constant 0 : index
    %c0_17 = arith.constant 0 : index
    %60 = vector.load %arg3[%c0_16, %c0_17] : memref<16x16xf32, #tpu.memory_space<vmem>>, vector<16x16xf32>
    %cst_18 = arith.constant dense<0.000000e+00> : vector<16x64xf32>
    %61 = tpu.matmul %60, %5, %cst_18 {dimension_numbers = #tpu.dot_dimension_numbers<[1], [0], [0], [1], [0, 0, 1, 1], [], []>} : vector<16x16xf32>, vector<16x64xf32>, vector<16x64xf32> -> vector<16x64xf32>
    %62 = vector.shape_cast %61 : vector<16x64xf32> to vector<2x8x64xf32>
    %63 = vector.extract_strided_slice %62 {offsets = [0, 0, 0], sizes = [2, 8, 32], strides = [1, 1, 1]} : vector<2x8x64xf32> to vector<2x8x32xf32>
    %64 = vector.shape_cast %6 : vector<1x32xf32> to vector<1x1x32xf32>
    %65 = vector.broadcast %64 : vector<1x1x32xf32> to vector<2x8x32xf32>
    %66 = arith.addf %63, %65 : vector<2x8x32xf32>
    %67 = vector.extract_strided_slice %62 {offsets = [0, 0, 32], sizes = [2, 8, 32], strides = [1, 1, 1]} : vector<2x8x64xf32> to vector<2x8x32xf32>
    %68 = vector.shape_cast %54 : vector<2x32xf32> to vector<2x1x32xf32>
    %69 = vector.broadcast %68 : vector<2x1x32xf32> to vector<2x8x32xf32>
    %70 = arith.addf %67, %69 : vector<2x8x32xf32>
    %71 = vector.shape_cast %7 : vector<1x32xf32> to vector<1x1x32xf32>
    %72 = vector.broadcast %71 : vector<1x1x32xf32> to vector<2x8x32xf32>
    %73 = arith.addf %70, %72 : vector<2x8x32xf32>
    %cst_19 = arith.constant 0.000000e+00 : f32
    %74 = vector.broadcast %cst_19 : f32 to vector<2x8x32xf32>
    %75 = arith.maximumf %73, %74 : vector<2x8x32xf32>
    %76 = vector.shape_cast %8 : vector<1x32xf32> to vector<1x1x32xf32>
    %77 = vector.broadcast %76 : vector<1x1x32xf32> to vector<2x8x32xf32>
    %78 = arith.mulf %75, %77 : vector<2x8x32xf32>
    %cst_20 = arith.constant dense<0.000000e+00> : vector<2x8xf32>
    %79 = vector.multi_reduction <add>, %78, %cst_20 [2] : vector<2x8x32xf32> to vector<2x8xf32>
    %cst_21 = arith.constant dense<0xFF800000> : vector<2xf32>
    %80 = vector.multi_reduction <maximumf>, %79, %cst_21 [1] : vector<2x8xf32> to vector<2xf32>
    %81 = vector.shape_cast %80 : vector<2xf32> to vector<2x1xf32>
    %82 = vector.broadcast %81 : vector<2x1xf32> to vector<2x8xf32>
    %83 = arith.subf %79, %82 : vector<2x8xf32>
    %84 = math.exp %83 : vector<2x8xf32>
    %cst_22 = arith.constant dense<0.000000e+00> : vector<2xf32>
    %85 = vector.multi_reduction <add>, %84, %cst_22 [1] : vector<2x8xf32> to vector<2xf32>
    %86 = vector.shape_cast %85 : vector<2xf32> to vector<2x1xf32>
    %87 = vector.broadcast %86 : vector<2x1xf32> to vector<2x8xf32>
    %88 = arith.divf %84, %87 : vector<2x8xf32>
    %89 = vector.shape_cast %88 : vector<2x8xf32> to vector<2x8x1xf32>
    %90 = vector.broadcast %89 : vector<2x8x1xf32> to vector<2x8x32xf32>
    %91 = arith.mulf %90, %66 : vector<2x8x32xf32>
    %cst_23 = arith.constant dense<0.000000e+00> : vector<2x32xf32>
    %92 = vector.multi_reduction <add>, %91, %cst_23 [1] : vector<2x8x32xf32> to vector<2x32xf32>
    %cst_24 = arith.constant dense<0.000000e+00> : vector<2x32xf32>
    %93 = tpu.matmul %92, %3, %cst_24 {dimension_numbers = #tpu.dot_dimension_numbers<[1], [0], [0], [1], [0, 0, 1, 1], [], []>} : vector<2x32xf32>, vector<32x32xf32>, vector<2x32xf32> -> vector<2x32xf32>
    %94 = vector.broadcast %10 : vector<1x32xf32> to vector<2x32xf32>
    %95 = arith.addf %93, %94 : vector<2x32xf32>
    %cst_25 = arith.constant 0.000000e+00 : f32
    %96 = vector.broadcast %cst_25 : f32 to vector<2x32xf32>
    %97 = arith.maximumf %95, %96 : vector<2x32xf32>
    %98 = arith.mulf %59, %97 : vector<2x32xf32>
    %cst_26 = arith.constant dense<0.000000e+00> : vector<2x10xf32>
    %99 = tpu.matmul %98, %4, %cst_26 {dimension_numbers = #tpu.dot_dimension_numbers<[1], [0], [0], [1], [0, 0, 1, 1], [], []>} : vector<2x32xf32>, vector<32x10xf32>, vector<2x10xf32> -> vector<2x10xf32>
    %100 = vector.broadcast %11 : vector<1x10xf32> to vector<2x10xf32>
    %101 = arith.addf %99, %100 : vector<2x10xf32>
    %c0_27 = arith.constant 0 : index
    %c0_28 = arith.constant 0 : index
    %102 = vector.load %arg5[%c0_27, %c0_28] : memref<2x10xf32, #tpu.memory_space<vmem>>, vector<2x10xf32>
    tpu.vector_store %arg5[%c0_27, %c0_28], %101 {strides = array<i32>} : memref<2x10xf32, #tpu.memory_space<vmem>>, vector<2x10xf32>,
    return
  }
  func.func @transform_0(%arg0: i32) -> (i32, i32) {
    %c0_i32 = arith.constant 0 : i32
    %c0_i32_0 = arith.constant 0 : i32
    %c0_i32_1 = arith.constant 0 : i32
    return %c0_i32, %c0_i32_0 : i32, i32
  }
  func.func @transform_1(%arg0: i32) -> (i32, i32) {
    %c0_i32 = arith.constant 0 : i32
    %c0_i32_0 = arith.constant 0 : i32
    %c0_i32_1 = arith.constant 0 : i32
    return %c0_i32, %c0_i32_0 : i32, i32
  }
  func.func @transform_2(%arg0: i32) -> (i32, i32) {
    %c0_i32 = arith.constant 0 : i32
    %c0_i32_0 = arith.constant 0 : i32
    %c0_i32_1 = arith.constant 0 : i32
    return %c0_i32, %c0_i32_0 : i32, i32
  }
  func.func @transform_3(%arg0: i32) -> (i32, i32) {
    %c0_i32 = arith.constant 0 : i32
    %c0_i32_0 = arith.constant 0 : i32
    %c0_i32_1 = arith.constant 0 : i32
    return %c0_i32, %c0_i32_0 : i32, i32
  }
  func.func @transform_4(%arg0: i32) -> (i32, i32) {
    %c0_i32 = arith.constant 0 : i32
    %c0_i32_0 = arith.constant 0 : i32
    %c0_i32_1 = arith.constant 0 : i32
    return %c0_i32, %c0_i32_0 : i32, i32
  }
}

</mosaic_0001>

<bundles_post_ra>
// kernel: attention_forward.1
= control target key start
LH: loop header
LB: loop body
LE: loop exit
PB: predicated region body
PF: predicated region fallthrough
CT: control target
= control target key end

     0   :  { %v1615_v2 = vmov 0   ;;  %v1616_v7 = vmov 0.0   ;;  %s1929_s0 = inlined_call_operand.vmem [shape: s32[16,1], index: 0, kind: input, shape index: {}]   ;;  %s1930_s1 = inlined_call_operand.vmem [shape: f32[56,32], index: 1, kind: input, shape index: {}]   ;;  %s1931_s2 = inlined_call_operand.vmem [shape: f32[16,16], index: 2, kind: input, shape index: {}]   ;;  %s1932_s3 = inlined_call_operand.vmem [shape: f32[32,256], index: 3, kind: input, shape index: {}]   ;;  %s1933_s4 = inlined_call_operand.hbm [shape: f32[2,10], index: 4, kind: output, shape index: {}]  }
   0x1   :  { %v26_v0 = vld [vmem:[%s1929_s0] sm:$0xff]  ;;  %v48_v1 = vld [vmem:[%s1930_s1 + $0x30] sm:$0xff]  ;;  %1567 = vset.pattern.permute.xlu0 %v1615_v2  ;;  %v47_v3 = vld [vmem:[%s1930_s1 + $0x28] sm:$0xff]  ;;  %1429 = vmatprep.subr.mxu1 %v1616_v7 }
   0x2   :  { %1412 = vmatprep.subr.mxu0 %v48_v1  ;;  %31 = vperm.xlu0 %1567, %v26_v0   ;;  %v46_v4 = vld [vmem:[%s1930_s1 + $0x20] sm:$0xff]  ;;  %v1665_v5 = vld [vmem:[%s1932_s3 + $0x30] sm:$0xff]  ;;  %v27_v6 = vld [vmem:[%s1929_s0 + $0x8] sm:$0xff] }
   0x3   :  { %1413 = vmatpush3.msra.mxu0 %v48_v1  ;;  %v45_v8 = vld [vmem:[%s1930_s1 + $0x18] sm:$0xff]  ;;  %1430 = vmatpush3.msra.mxu1 %v1665_v5  ;;  %v1678_v9 = vld [vmem:[%s1932_s3 + $0x20] sm:$0xff] }
   0x4   :  { %1414 = vmatprep.subr.mxu0 %v47_v3 }
   0x5   :  { %1415 = vmatpush3.msra.mxu0 %v47_v3 }
   0x6   :  { %9 = vsyncpa [#allocation3], 0  ;;  %1416 = vmatprep.subr.mxu0 %v46_v4  ;;  %1431 = vmatprep.subr.mxu1 %v1616_v7  ;;  %v44_v10 = vld [vmem:[%s1930_s1 + $0x10] sm:$0xff]  ;;  %v43_v12 = vld [vmem:[%s1930_s1 + $0x8] sm:$0xff]  ;;  %vm1617_vm0 = vmmov 0   ;;  %v28_v15 = vlaneseq  ;;  %vm49_vm1 = vcmask 457728  }
   0x7   :  { %34 = vperm.xlu0 %1567, %v27_v6   ;;  %1417 = vmatpush3.msra.mxu0 %v46_v4  ;;  %v1687_v11 = vld [vmem:[%s1932_s3 + $0x10] sm:$0xff]  ;;  %v1697_v13 = vld [vmem:[%s1932_s3] sm:$0xff]  ;;  %vm131_vm4 = vcmask 261120   ;;  %v1814_v1 = vld [vmem:[%s1932_s3 + $0x18] sm:$0xff]  ;;  %s1619_s16 = smov 80   ;;  %vm865_vm5 = vcmask 130048  }
   0x8   :  { %1418 = vmatprep.subr.mxu0 %v45_v8  ;;  %1432 = vmatpush3.msra.mxu1 %v1678_v9  ;;  %v42_v14 = vld [vmem:[%s1930_s1] sm:$0xff]  ;;  %v1721_v16 = vand.u32 127, %v28_v15  ;;  %s1618_s1 = smov 96   ;;  %s1622_s23 = smov 16   ;;  %vm1042_vm6 = vcmask 1041409   ;;  %vm1045_vm7 = vcmask 58368  }
   0x9   :  { %1419 = vmatpush3.msra.mxu0 %v45_v8  ;;  %1433 = vmatprep.subr.mxu1 %v1616_v7  ;;  %v855_v3 = vld [vmem:[%s1931_s2] sm:$0xff]  ;;  %s1623_s24 = smov 112   ;;  %vm1312_vm8 = vcmask 74752  }
   0xa   :  { %1420 = vmatprep.subr.mxu0 %v44_v10  ;;  %1434 = vmatpush3.msra.mxu1 %v1687_v11 }
   0xb   :  { %1421 = vmatpush3.msra.mxu0 %v44_v10  ;;  %1435 = vmatprep.subr.mxu1 %v1616_v7 }
   0xc   :  { %1422 = vmatprep.subr.mxu0 %v43_v12  ;;  %1436 = vmatpush3.msra.mxu1 %v1697_v13 }
   0xd   :  { %1423 = vmatpush3.msra.mxu0 %v43_v12  ;;  %1437 = vmatprep.mubr.msk.f32.mxu1 %vm1617_vm0, %v1616_v7 }
   0xe   :  { %1424 = vmatprep.subr.mxu0 %v42_v14  ;;  %1438 = vmatmul.mubr.f32.vlgmr.msra.gmra.mxu1 %v1616_v7 }
   0xf   :  { %1425 = vmatpush3.msra.mxu0 %v42_v14  ;;  %1440 = vmatprep.subr.mxu1 %v1616_v7 }
  0x10   :  { %1441 = vmatpush3.msra.mxu1 %v1665_v5  ;;  %1448 = vmatprep.mubr.msk.f32.mxu1 %vm1617_vm0, %v1616_v7 }
  0x11   :  { %1442 = vmatprep.subr.mxu1 %v1616_v7  ;;  %1451 = vmatprep.subr.mxu0 %v1616_v7 }
  0x12   :  { %1443 = vmatpush3.msra.mxu1 %v1678_v9  ;;  %1568 = vset.pattern.permute.xlu1 %v1615_v2  ;;  %v1820_v2 = vld [vmem:[%s1932_s3 + $0x8] sm:$0xff] }
  0x13   :  { %1444 = vmatprep.subr.mxu1 %v1616_v7  ;;  %767 = vrot.lane.b32.xlu1 %v1665_v5, %s1618_s1 }
  0x14   :  { %1445 = vmatpush3.msra.mxu1 %v1687_v11  ;;  %763 = vrot.lane.b32.xlu0 %v1687_v11, %s1618_s1 }
  0x15   :  { %1446 = vmatprep.subr.mxu1 %v1616_v7 }
  0x16   :  { %1447 = vmatpush3.msra.mxu1 %v1697_v13 }
  0x17   :  { %1462 = vmatprep.subr.mxu1 %v1616_v7  ;;  %765 = vrot.lane.b32.xlu1 %v1678_v9, %s1618_s1 }
  0x18   :  { %861 = vrot.lane.b32.xlu0 %v1814_v1, %s1619_s16 }
  0x1b   :  { %761 = vrot.lane.b32.xlu1 %v1697_v13, %s1618_s1 }
  0x1f   :  { %859 = vrot.lane.b32.xlu1 %v1820_v2, %s1619_s16 }
  0x7d   :  { %v32_v17 = vpop.permute.xlu0 %31 }
  0x7e   :  { %vm36_vm2 = vcmp.eq.s32.totalorder %v1721_v16, %v32_v17  ;;  %v856_v17 = vld [vmem:[%s1931_s2 + $0x8] sm:$0xff]  ;;  %s1621_s2 = smov 32  }
  0x7f   :  { %v1328_v18 = vsel %vm36_vm2, 1.0, %v1616_v7 }
  0x80   :  { %1426 = vmatprep.mubr.msk.f32.mxu0 %vm49_vm1, %v1328_v18 }
  0x82   :  { %v35_v19 = vpop.permute.xlu0 %34 }
  0x83   :  { %vm37_vm3 = vcmp.eq.s32.totalorder %v1721_v16, %v35_v19 }
  0x84   :  { %v1329_v20 = vsel %vm37_vm3, 1.0, %v1616_v7 }
  0x85   :  { %1427 = vmatmul.mubr.msk.f32.vlgmr.msra.gmra.mxu0 %vm49_vm1, %v1329_v20  ;;  %v768_v61 = vpop.permute.xlu1 %767  ;;  %v1620_v20 = vmov 1966171168  }
  0x86   :  { %1452 = vmatpush3.msra.mxu0 %v1665_v5  ;;  %1459 = vmatprep.mubr.msk.f32.mxu0 %vm1617_vm0, %v1616_v7  ;;  %v764_v63 = vpop.permute.xlu0 %763 }
  0x87   :  { %1453 = vmatprep.subr.mxu0 %v1616_v7 }
  0x88   :  { %1454 = vmatpush3.msra.mxu0 %v1678_v9 }
  0x89   :  { %1455 = vmatprep.subr.mxu0 %v1616_v7  ;;  %v766_v62 = vpop.permute.xlu1 %765 }
  0x8a   :  { %1456 = vmatpush3.msra.mxu0 %v1687_v11  ;;  %v862_v12 = vpop.permute.xlu0 %861 }
  0x8b   :  { %1457 = vmatprep.subr.mxu0 %v1616_v7 }
  0x8c   :  { %1458 = vmatpush3.msra.mxu0 %v1697_v13 }
  0x8d   :  { %1473 = vmatprep.subr.mxu0 %v1616_v7  ;;  %v762_v0 = vpop.permute.xlu1 %761 }
  0x91   :  { %v860_v14 = vpop.permute.xlu1 %859 }
  0xce   :  { %v201_v21 = vpop.f32.mrf.mxu1 }
  0xd0   :  { %v1439_v22 = vpop.f32.mrf.mxu1 }
  0xd1   :  { %v1840_v22 = vshrl.u32 %v28_v15, 7 }
 0x145   :  { %v1737_v23 = vpop.f32.mrf.mxu0 }
 0x147   :  { %v122_v24 = vpop.f32.mrf.mxu0 }
 0x148   :  { %v205_v25 = vadd.f32 %v201_v21, %v122_v24  ;;  %v959_v21 = vunpack.c.l.s4 %v1620_v20 }
 0x14a   :  { %1569 = vtanh.f32 %v205_v25 }
 0x157   :  { %v1570_v26 = vpop.eup %1569 }
 0x158   :  { %1449 = vmatmul.mubr.msk.f32.vlgmr.msra.gmra.mxu1 %vm131_vm4, %v1570_v26 }
 0x159   :  { %1463 = vmatpush3.msra.mxu1 %v1665_v5  ;;  %1470 = vmatprep.mubr.msk.f32.mxu1 %vm1617_vm0, %v1616_v7 }
 0x15a   :  { %1464 = vmatprep.subr.mxu1 %v1616_v7 }
 0x15b   :  { %1465 = vmatpush3.msra.mxu1 %v1678_v9 }
 0x15c   :  { %1466 = vmatprep.subr.mxu1 %v1616_v7 }
 0x15d   :  { %1467 = vmatpush3.msra.mxu1 %v1687_v11 }
 0x15e   :  { %1468 = vmatprep.subr.mxu1 %v1616_v7 }
 0x15f   :  { %1469 = vmatpush3.msra.mxu1 %v1697_v13 }
 0x160   :  { %1484 = vmatprep.subr.mxu1 %v1616_v7 }
 0x218   :  { %v276_v27 = vpop.f32.mrf.mxu1 }
 0x219   :  { %v281_v28 = vrot.slane %v276_v27, 6  ;;  %v1847_v27 = vsub.s32 0, %v1840_v22 }
 0x21a   :  { %v1450_v29 = vpop.f32.mrf.mxu1 }
 0x21b   :  { %v283_v30 = vadd.f32 %v281_v28, %v122_v24 }
 0x21d   :  { %1571 = vtanh.f32 %v283_v30 }
 0x22a   :  { %v1572_v31 = vpop.eup %1571 }
 0x22b   :  { %v286_v32 = vrot.slane %v1572_v31, 2  ;;  %v1850_v31 = vsub.s32 1, %v1840_v22 }
 0x22d   :  { %1460 = vmatmul.mubr.msk.f32.vlgmr.msra.gmra.mxu0 %vm131_vm4, %v286_v32 }
 0x22e   :  { %1474 = vmatpush3.msra.mxu0 %v1665_v5  ;;  %1481 = vmatprep.mubr.msk.f32.mxu0 %vm1617_vm0, %v1616_v7 }
 0x22f   :  { %1475 = vmatprep.subr.mxu0 %v1616_v7 }
 0x230   :  { %1476 = vmatpush3.msra.mxu0 %v1678_v9 }
 0x231   :  { %1477 = vmatprep.subr.mxu0 %v1616_v7 }
 0x232   :  { %1478 = vmatpush3.msra.mxu0 %v1687_v11 }
 0x233   :  { %1479 = vmatprep.subr.mxu0 %v1616_v7 }
 0x234   :  { %1480 = vmatpush3.msra.mxu0 %v1697_v13 }
 0x235   :  { %1495 = vmatprep.subr.mxu0 %v1616_v7 }
 0x2ed   :  { %v355_v33 = vpop.f32.mrf.mxu0 }
 0x2ee   :  { %v360_v34 = vrot.slane %v355_v33, 4  ;;  %v1010_v33 = vsub.s32 2, %v1840_v22 }
 0x2ef   :  { %v1461_v35 = vpop.f32.mrf.mxu0 }
 0x2f0   :  { %v362_v36 = vadd.f32 %v360_v34, %v122_v24  ;;  %v999_v35 = vrot.slane %v1820_v2, %v1850_v31 }
 0x2f2   :  { %1573 = vtanh.f32 %v362_v36  ;;  %v1011_v36 = vrot.slane %v1820_v2, %v1010_v33 }
 0x2ff   :  { %v1574_v37 = vpop.eup %1573 }
 0x300   :  { %v365_v38 = vrot.slane %v1574_v37, 4 }
 0x302   :  { %1471 = vmatmul.mubr.msk.f32.vlgmr.msra.gmra.mxu1 %vm131_vm4, %v365_v38 }
 0x303   :  { %1485 = vmatpush3.msra.mxu1 %v1665_v5  ;;  %1492 = vmatprep.mubr.msk.f32.mxu1 %vm1617_vm0, %v1616_v7 }
 0x304   :  { %1486 = vmatprep.subr.mxu1 %v1616_v7 }
 0x305   :  { %1487 = vmatpush3.msra.mxu1 %v1678_v9 }
 0x306   :  { %1488 = vmatprep.subr.mxu1 %v1616_v7 }
 0x307   :  { %1489 = vmatpush3.msra.mxu1 %v1687_v11 }
 0x308   :  { %1490 = vmatprep.subr.mxu1 %v1616_v7 }
 0x309   :  { %1491 = vmatpush3.msra.mxu1 %v1697_v13 }
 0x30a   :  { %1506 = vmatprep.subr.mxu1 %v1616_v7 }
 0x3c2   :  { %v434_v39 = vpop.f32.mrf.mxu1 }
 0x3c3   :  { %v439_v40 = vrot.slane %v434_v39, 2 }
 0x3c4   :  { %v1472_v41 = vpop.f32.mrf.mxu1 }
 0x3c5   :  { %v441_v42 = vadd.f32 %v439_v40, %v122_v24 }
 0x3c7   :  { %1575 = vtanh.f32 %v441_v42 }
 0x3d4   :  { %v1576_v43 = vpop.eup %1575 }
 0x3d5   :  { %v444_v44 = vrot.slane %v1576_v43, 6 }
 0x3d7   :  { %1482 = vmatmul.mubr.msk.f32.vlgmr.msra.gmra.mxu0 %vm131_vm4, %v444_v44 }
 0x3d8   :  { %1496 = vmatpush3.msra.mxu0 %v1665_v5  ;;  %1503 = vmatprep.mubr.msk.f32.mxu0 %vm1617_vm0, %v1616_v7 }
 0x3d9   :  { %1497 = vmatprep.subr.mxu0 %v1616_v7 }
 0x3da   :  { %1498 = vmatpush3.msra.mxu0 %v1678_v9 }
 0x3db   :  { %1499 = vmatprep.subr.mxu0 %v1616_v7 }
 0x3dc   :  { %1500 = vmatpush3.msra.mxu0 %v1687_v11 }
 0x3dd   :  { %1501 = vmatprep.subr.mxu0 %v1616_v7 }
 0x3de   :  { %1502 = vmatpush3.msra.mxu0 %v1697_v13 }
 0x3df   :  { %1517 = vmatprep.subr.mxu0 %v1616_v7 }
 0x497   :  { %v513_v45 = vpop.f32.mrf.mxu0 }
 0x498   :  { %v517_v46 = vadd.f32 %v1737_v23, %v513_v45 }
 0x499   :  { %v1483_v47 = vpop.f32.mrf.mxu0 }
 0x49a   :  { %1577 = vtanh.f32 %v517_v46 }
 0x4a7   :  { %v1578_v48 = vpop.eup %1577 }
 0x4a8   :  { %1493 = vmatmul.mubr.msk.f32.vlgmr.msra.gmra.mxu1 %vm131_vm4, %v1578_v48 }
 0x4a9   :  { %1507 = vmatpush3.msra.mxu1 %v1665_v5  ;;  %1514 = vmatprep.mubr.msk.f32.mxu1 %vm1617_vm0, %v1616_v7 }
 0x4aa   :  { %1508 = vmatprep.subr.mxu1 %v1616_v7 }
 0x4ab   :  { %1509 = vmatpush3.msra.mxu1 %v1678_v9 }
 0x4ac   :  { %1510 = vmatprep.subr.mxu1 %v1616_v7 }
 0x4ad   :  { %1511 = vmatpush3.msra.mxu1 %v1687_v11 }
 0x4ae   :  { %1512 = vmatprep.subr.mxu1 %v1616_v7 }
 0x4af   :  { %1513 = vmatpush3.msra.mxu1 %v1697_v13 }
 0x4b0   :  { %1528 = vmatprep.subr.mxu1 %v862_v12 }
 0x568   :  { %v588_v49 = vpop.f32.mrf.mxu1 }
 0x569   :  { %v593_v50 = vrot.slane %v588_v49, 6 }
 0x56a   :  { %v1494_v51 = vpop.f32.mrf.mxu1 }
 0x56b   :  { %v595_v52 = vadd.f32 %v1737_v23, %v593_v50 }
 0x56d   :  { %1579 = vtanh.f32 %v595_v52 }
 0x57a   :  { %v1580_v53 = vpop.eup %1579 }
 0x57b   :  { %v598_v54 = vrot.slane %v1580_v53, 2 }
 0x57d   :  { %1504 = vmatmul.mubr.msk.f32.vlgmr.msra.gmra.mxu0 %vm131_vm4, %v598_v54 }
 0x57e   :  { %1525 = vmatprep.mubr.msk.f32.mxu0 %vm1617_vm0, %v1616_v7  ;;  %1518 = vmatpush3.msra.mxu0 %v768_v61 }
 0x57f   :  { %1519 = vmatprep.subr.mxu0 %v1616_v7 }
 0x580   :  { %1520 = vmatpush3.msra.mxu0 %v766_v62 }
 0x581   :  { %1521 = vmatprep.subr.mxu0 %v1616_v7 }
 0x582   :  { %1522 = vmatpush3.msra.mxu0 %v764_v63 }
 0x583   :  { %1523 = vmatprep.subr.mxu0 %v1616_v7 }
 0x584   :  { %1524 = vmatpush3.msra.mxu0 %v762_v0 }
 0x585   :  { %1546 = vmatprep.subr.mxu0 %v1616_v7 }
 0x63d   :  { %v667_v55 = vpop.f32.mrf.mxu0 }
 0x63e   :  { %v672_v56 = vrot.slane %v667_v55, 4  ;;  %v1036_v55 = vsub.s32 %v1721_v16, %v1840_v22 }
 0x63f   :  { %v1505_v57 = vpop.f32.mrf.mxu0 }
 0x640   :  { %v674_v58 = vadd.f32 %v1737_v23, %v672_v56 }
 0x642   :  { %1581 = vtanh.f32 %v674_v58 }
 0x64f   :  { %v1582_v59 = vpop.eup %1581 }
 0x650   :  { %v677_v60 = vrot.slane %v1582_v59, 4 }
 0x652   :  { %1515 = vmatmul.mubr.msk.f32.vlgmr.msra.gmra.mxu1 %vm131_vm4, %v677_v60 }
 0x653   :  { %1532 = vmatprep.mubr.msk.f32.mxu1 %vm865_vm5, %v855_v3  ;;  %1529 = vmatpush3.msra.mxu1 %v862_v12  ;;  %v950_v12 = vrot.slane %v1820_v2, %v1847_v27 }
 0x654   :  { %1530 = vmatprep.subr.mxu1 %v860_v14 }
 0x655   :  { %1531 = vmatpush3.msra.mxu1 %v860_v14 }
 0x656   :  { %1533 = vmatmul.mubr.msk.f32.vlgmr.msra.gmra.mxu1 %vm865_vm5, %v856_v17  ;;  %1535 = vmatprep.subr.mxu1 %v1616_v7 }
 0x657   :  { %1543 = vmatprep.mubr.msk.f32.mxu1 %vm1617_vm0, %v1616_v7 }
 0x712   :  { %v746_v4 = vpop.f32.mrf.mxu1 }
 0x713   :  { %v751_v6 = vrot.slane %v746_v4, 2 }
 0x714   :  { %v1516_v8 = vpop.f32.mrf.mxu1 }
 0x715   :  { %v753_v10 = vadd.f32 %v1737_v23, %v751_v6  ;;  %v960_v23 = vunpack.c.0.s8 %v959_v21 }
 0x716   :  { %v1862_v37 = vpop.f32.mrf.mxu1 }
 0x717   :  { %1583 = vtanh.f32 %v753_v10  ;;  %v963_v24 = vsub.s32 %v960_v23, %v1840_v22 }
 0x718   :  { %v1864_v39 = vpop.f32.mrf.mxu1 }
 0x724   :  { %v1584_v18 = vpop.eup %1583 }
 0x725   :  { %v756_v19 = vrot.slane %v1584_v18, 6 }
 0x727   :  { %1526 = vmatmul.mubr.msk.f32.vlgmr.msra.gmra.mxu0 %vm131_vm4, %v756_v19 }
 0x728   :  { %1554 = vmatprep.mubr.msk.f32.mxu0 %vm1617_vm0, %v1616_v7 }
 0x7e7   :  { %v1843_v25 = vpop.f32.mrf.mxu0 }
 0x7e8   :  { %v964_v26 = vrot.slane %v1843_v25, %v963_v24 }
 0x7e9   :  { %v1527_v28 = vpop.f32.mrf.mxu0 }
 0x7ea   :  { %v965_v29 = vcombine.high %v964_v26, %v964_v26  ;;  %v972_v30 = vrot.slane %v964_v26, %v963_v24 }
 0x7ec   :  { %v979_v32 = vrot.slane %v965_v29, %v963_v24  ;;  %v983_v15 = vrot.slane %v972_v30, %v1847_v27 }
 0x7ee   :  { %988 = vrot.lane.b32.xlu0 %v983_v15, %s1621_s2  ;;  %v987_v34 = vrot.slane %v979_v32, %v1847_v27  ;;  %v847_v15 = vsub.s32 3, %v1840_v22 }
 0x7f0   :  { %990 = vrot.lane.b32.xlu1 %v987_v34, %s1621_s2  ;;  %v848_v33 = vrot.slane %v1820_v2, %v847_v15 }
 0x7f2   :  { %1001 = vrot.lane.b32.xlu0 %v999_v35, %s1622_s23 }
 0x7f4   :  { %1013 = vrot.lane.b32.xlu1 %v1011_v36, %s1622_s23 }
 0x860   :  { %v989_v38 = vpop.permute.xlu0 %988 }
 0x861   :  { %v994_v41 = vadd.f32 %v989_v38, %v1864_v39 }
 0x862   :  { %v991_v40 = vpop.permute.xlu1 %990 }
 0x863   :  { %v995_v42 = vadd.f32 %v1862_v37, %v991_v40 }
 0x864   :  { %v1002_v43 = vpop.permute.xlu0 %1001 }
 0x865   :  { %v1004_v44 = vadd.f32 %v1002_v43, %v994_v41  ;;  %v1005_v45 = vadd.f32 %v1002_v43, %v995_v42 }
 0x866   :  { %v1014_v46 = vpop.permute.xlu1 %1013 }
 0x867   :  { %v1006_v47 = vmax.f32 %v1004_v44, 0.0  ;;  %v1007_v48 = vmax.f32 %v1005_v45, 0.0 }
 0x869   :  { %v1016_v49 = vmul.f32 %v1014_v46, %v1006_v47  ;;  %v1017_v50 = vmul.f32 %v1014_v46, %v1007_v48 }
 0x86b   :  { %1022 = vrot.lane.b32.xlu1 %v1017_v50, %s1618_s1  ;;  %1020 = vrot.lane.b32.xlu0 %v1016_v49, %s1618_s1 }
 0x8dd   :  { %v1023_v51 = vpop.permute.xlu1 %1022  ;;  %v1021_v52 = vpop.permute.xlu0 %1020 }
 0x8de   :  { %v1029_v53 = vsel %vm131_vm4, %v1023_v51, 0.0  ;;  %v1026_v54 = vsel %vm131_vm4, %v1021_v52, 0.0 }
 0x8df   :  { %1030 = vadd.xlane.f32.xlu1 %v1029_v53  ;;  %1027 = vadd.xlane.f32.xlu0 %v1026_v54 }
 0x968   :  { %v1031_v56 = vpop.xlane.xlu1 %1030  ;;  %v1028_v57 = vpop.xlane.xlu0 %1027 }
 0x969   :  { %v1041_v58 = vrot.slane %v1031_v56, %v1036_v55  ;;  %v1037_v59 = vrot.slane %v1028_v57, %v1036_v55 }
 0x96b   :  { %v1043_v60 = vsel %vm1042_vm6, %v1041_v58, %v1037_v59 }
 0x96c   :  { %v1046_v61 = vsel %vm1045_vm7, %v1043_v60, -inf }
 0x96d   :  { %1047 = vmax.xlane.f32.xlu0 %v1046_v61 }
 0x9f6   :  { %v1048_v62 = vpop.xlane.xlu0 %1047 }
 0x9f7   :  { %v1053_v63 = vrot.slane %v1048_v62, %v1847_v27  ;;  %v1057_v0 = vrot.slane %v1048_v62, %v1850_v31 }
 0x9f9   :  { %v1060_v3 = vsub.f32 %v1028_v57, %v1053_v63  ;;  %v1061_v4 = vsub.f32 %v1031_v56, %v1057_v0  ;;  %v25_v56 = vld [vmem:[%s1932_s3 + $0x38] sm:$0xff]  ;;  %v23_v57 = vld [vmem:[%s1932_s3 + $0x28] sm:$0xff]  ;;  %s1624_s3 = smov [#allocation2]  }
 0x9fa   :  { %1547 = vmatpush3.msra.mxu0 %v25_v56  ;;  %s1320_s29 = sshll.u32 %s1624_s3, 4  ;;  %s1321_s29 = int_to_ptr.vmem [resolvable:$true] %s1320_s29 }
 0x9fb   :  { %v1062_v6 = vmul.f32 1.442695, %v1060_v3  ;;  %v1064_v16 = vmul.f32 1.442695, %v1061_v4  ;;  %1548 = vmatprep.subr.mxu0 %v1616_v7  ;;  %v1231_v4 = vsub.s32 5, %v1840_v22  ;;  %s1593_s30 = scalar_lea.vmem %s1321_s29, 32  ;;  %p1598_p1 = scmp.lt.s32.totalorder %s1321_s29, %s1321_s29 }
 0x9fc   :  { %1549 = vmatpush3.msra.mxu0 %v23_v57  ;;  %p1594_p0 = scmp.ne.s32.totalorder %s1321_s29, %s1593_s30  ;;  %p1599_p2 = scmp.lt.s32.totalorder %s1593_s30, %s1593_s30 }
 0x9fd   :  { %1585 = vpow2.f32 %v1062_v6  ;;  %1550 = vmatprep.subr.mxu0 %v1616_v7 }
 0x9fe   :  { %1587 = vpow2.f32 %v1064_v16  ;;  %1551 = vmatpush3.msra.mxu0 %v1814_v1  ;;  %v1232_v1 = vrot.slane %v1820_v2, %v1231_v4  ;;  %p1600_p3 = por %p1599_p2, %p1598_p1 }
 0x9ff   :  { %1552 = vmatprep.subr.mxu0 %v1616_v7 }
 0xa00   :  { %1553 = vmatpush3.msra.mxu0 %v1820_v2  ;;  %p1601_p4 = pnand %p1600_p3, %p1594_p0 }
 0xa0a   :  { %v1586_v8 = vpop.eup %1585 }
 0xa0b   :  { %v1588_v10 = vpop.eup %1587  ;;  %1069 = vperm.xlu0 %1567, %v1586_v8  }
 0xa0c   :  { %1072 = vperm.xlu1 %1568, %v1588_v10  }
 0xa0f   :  { %952 = vrot.lane.b32.xlu0 %v950_v12, %s1623_s24 }
 0xa86   :  { %v1070_v14 = vpop.permute.xlu0 %1069 }
 0xa87   :  { %v1073_v17 = vpop.permute.xlu1 %1072  ;;  %v1077_v18 = vrot.slane %v1070_v14, %v1036_v55 }
 0xa88   :  { %v1081_v19 = vrot.slane %v1073_v17, %v1036_v55 }
 0xa8a   :  { %v1082_v20 = vsel %vm1042_vm6, %v1081_v19, %v1077_v18 }
 0xa8b   :  { %v1084_v21 = vsel %vm1045_vm7, %v1082_v20, 0.0 }
 0xa8c   :  { %1085 = vadd.xlane.f32.xlu1 %v1084_v21 }
 0xb15   :  { %v1086_v23 = vpop.xlane.xlu1 %1085 }
 0xb16   :  { %v1091_v24 = vrot.slane %v1086_v23, %v1847_v27  ;;  %v1095_v26 = vrot.slane %v1086_v23, %v1850_v31  ;;  %v1130_v27 = vsub.s32 4, %v1840_v22 }
 0xb18   :  { %1589 = vrcp.f32 %v1091_v24  ;;  %v1131_v31 = vrot.slane %v1820_v2, %v1130_v27 }
 0xb19   :  { %1591 = vrcp.f32 %v1095_v26 }
 0xb25   :  { %v1590_v28 = vpop.eup %1589 }
 0xb26   :  { %v1099_v29 = vmul.f32 %v1590_v28, %v1586_v8  ;;  %v1592_v30 = vpop.eup %1591 }
 0xb27   :  { %v1101_v32 = vmul.f32 %v1592_v30, %v1588_v10 }
 0xb28   :  { %1104 = vperm.xlu0 %1567, %v1099_v29  }
 0xb2c   :  { %1109 = vperm.xlu0 %1567, %v1101_v32  }
 0xb30   :  { %1141 = vrot.lane.b32.xlu0 %v1665_v5, %s1621_s2  ;;  %v953_v5 = vpop.permute.xlu0 %952 }
 0xb31   :  { %v956_v35 = vadd.f32 %v1862_v37, %v953_v5 }
 0xb34   :  { %1139 = vrot.lane.b32.xlu0 %v1678_v9, %s1621_s2  ;;  %v955_v9 = vadd.f32 %v953_v5, %v1864_v39 }
 0xb38   :  { %1137 = vrot.lane.b32.xlu0 %v1687_v11, %s1621_s2 }
 0xb3c   :  { %1135 = vrot.lane.b32.xlu0 %v1697_v13, %s1621_s2 }
 0xb40   :  { %1148 = vrot.lane.b32.xlu0 %v1131_v31, %s1623_s24 }
 0xb44   :  { %850 = vrot.lane.b32.xlu0 %v848_v33, %s1622_s23 }
 0xba3   :  { %v1105_v34 = vpop.permute.xlu0 %1104 }
 0xba4   :  { %v1112_v11 = vmul.f32 %v1105_v34, %v955_v9 }
 0xba6   :  { %v1114_v36 = vsel %vm131_vm4, %v1112_v11, 0.0 }
 0xba7   :  { %v1115_v13 = vrot.slane %v1114_v36, 4  ;;  %v1110_v38 = vpop.permute.xlu0 %1109 }
 0xba8   :  { %v1113_v40 = vmul.f32 %v1110_v38, %v956_v35 }
 0xba9   :  { %v1116_v41 = vadd.f32 %v1115_v13, %v1114_v36 }
 0xbaa   :  { %v1121_v42 = vsel %vm131_vm4, %v1113_v40, 0.0 }
 0xbab   :  { %v1117_v43 = vrot.slane %v1116_v41, 2  ;;  %v1122_v44 = vrot.slane %v1121_v42, 4  ;;  %v1142_v45 = vpop.permute.xlu0 %1141 }
 0xbac   :  { %1536 = vmatpush3.msra.mxu1 %v1142_v45 }
 0xbad   :  { %v1118_v46 = vadd.f32 %v1117_v43, %v1116_v41  ;;  %v1123_v47 = vadd.f32 %v1122_v44, %v1121_v42  ;;  %1537 = vmatprep.subr.mxu1 %v1616_v7 }
 0xbaf   :  { %v1124_v39 = vrot.slane %v1123_v47, 2  ;;  %v1140_v48 = vpop.permute.xlu0 %1139  ;;  %v1119_v37 = vrot.slane %v1118_v46, 1 }
 0xbb0   :  { %1538 = vmatpush3.msra.mxu1 %v1140_v48 }
 0xbb1   :  { %v1125_v49 = vadd.f32 %v1124_v39, %v1123_v47  ;;  %1539 = vmatprep.subr.mxu1 %v1616_v7  ;;  %v1120_v52 = vadd.f32 %v1119_v37, %v1118_v46 }
 0xbb3   :  { %v1126_v50 = vrot.slane %v1125_v49, 1  ;;  %v1138_v51 = vpop.permute.xlu0 %1137 }
 0xbb4   :  { %1540 = vmatpush3.msra.mxu1 %v1138_v51 }
 0xbb5   :  { %v1127_v53 = vadd.f32 %v1126_v50, %v1125_v49  ;;  %1541 = vmatprep.subr.mxu1 %v1616_v7 }
 0xbb7   :  { %v1136_v54 = vpop.permute.xlu0 %1135  ;;  %v1134_v55 = vsel %vm1042_vm6, %v1127_v53, %v1120_v52 }
 0xbb8   :  { %1542 = vmatpush3.msra.mxu1 %v1136_v54 }
 0xbb9   :  { %1544 = vmatmul.mubr.msk.f32.vlgmr.msra.gmra.mxu1 %vm131_vm4, %v1134_v55 }
 0xbbb   :  { %v1149_v58 = vpop.permute.xlu0 %1148 }
 0xbbf   :  { %v851_v63 = vpop.permute.xlu0 %850 }
 0xbc0   :  { %v853_v0 = vadd.f32 %v851_v63, %v1843_v25 }
 0xbc2   :  { %v854_v3 = vmax.f32 %v853_v0, 0.0 }
 0xc79   :  { %v1219_v59 = vpop.f32.mrf.mxu1 }
 0xc7a   :  { %v1220_v60 = vadd.f32 %v1219_v59, %v1149_v58 }
 0xc7b   :  { %v1545_v61 = vpop.f32.mrf.mxu1 }
 0xc7c   :  { %v1223_v62 = vmax.f32 %v1220_v60, 0.0 }
 0xc7e   :  { %1225 = vrot.lane.b32.xlu1 %v1223_v62, %s1621_s2 }
 0xcf0   :  { %v1226_v6 = vpop.permute.xlu1 %1225 }
 0xcf1   :  { %v1228_v16 = vmul.f32 %v1226_v6, %v854_v3 }
 0xcf3   :  { %1234 = vrot.lane.b32.xlu0 %v1228_v16, %s1618_s1 }
 0xcf7   :  { %1237 = vrot.lane.b32.xlu0 %v1232_v1, %s1623_s24 }
 0xd65   :  { %v1235_v7 = vpop.permute.xlu0 %1234 }
 0xd66   :  { %1555 = vmatmul.mubr.msk.f32.vlgmr.msra.gmra.mxu0 %vm131_vm4, %v1235_v7 }
 0xd69   :  { %v1238_v8 = vpop.permute.xlu0 %1237 }
 0xe26   :  { %v1308_v10 = vpop.f32.mrf.mxu0 }
 0xe27   :  { %v1309_v25 = vadd.f32 %v1308_v10, %v1238_v8 }
 0xe28   :  { %v1556_v12 = vpop.f32.mrf.mxu0 }
 0xe29   :  { %1313 = vst.msk [vmem:[#allocation2] sm:$0x3] %vm1312_vm8, %v1309_v25 }
 0xe2a   :  { %1604 = shalt.err (!%p1601_p4)
}
 0xe2b   :  { %1323 = dma.vmem_to_hbm [thread:$0]  %s1321_s29, 32, %s1933_s4, [#allocation3]  }
 0xe2c   :  { %1613 = dma.done.wait [#allocation3], 32  }
 0xe2d   :  { %1614 = vsyncadd [#allocation3], 4294967264 }
 0xe2e   :  { %1327 = vsyncpa [#allocation3], 1 }

</bundles_post_ra>
